<compile_context>
chip_gen: v7x
topology: tpu7x:2x2x1
jax: 0.10.0
libtpu: 0.0.40
codegen_flags: <defaults>
</compile_context>

<pallas_src>
import jax
import jax.numpy as jnp
from jax.experimental import pallas as pl
from jax.experimental.pallas import tpu as pltpu


_SPLIT_BYTES = 2 << 20  # above this size, force >=2 blocks (feed both v7x TCs)


def _round_up(x: int, m: int) -> int:
    return ((x + m - 1) // m) * m


def _hadamard_kernel(x1_ref, x2_ref, o_ref):
    # Pure VPU elementwise multiply; dtype casts ride along for free since
    # the kernel is HBM-bound.
    o_ref[...] = x1_ref[...].astype(o_ref.dtype) * x2_ref[...].astype(o_ref.dtype)


def _vmem_budget():
    """(max_block_bytes, scoped_vmem_limit_bytes), tuned per TPU generation."""
    try:
        cap = int(getattr(pltpu.get_tpu_info(), "vmem_capacity_bytes", 64 << 20))
    except Exception:  # query unavailable -> assume the smallest VMEM (v7x)
        cap = 64 << 20
    if cap >= (100 << 20):        # v5e / v6e: 128 MiB VMEM per core
        return 8 << 20, 64 << 20  # 8 MiB blocks, 64 MiB scoped limit
    return 4 << 20, 48 << 20      # v7x: 64 MiB VMEM per core -> 4 MiB blocks


def _compiler_params(vmem_limit):
    return pltpu.CompilerParams(
        dimension_semantics=("parallel",),  # shard grid across TCs on v7x
        vmem_limit_bytes=vmem_limit,
    )


def hadamard(x1: jax.Array, x2: jax.Array) -> jax.Array:
    """Elementwise product of x1 and x2 (same semantics as Hadamard.forward)."""
    assert x1.shape[1] == x2.shape[1], "channel dims must match"
    # TODO(synk): PyTorch's `*` would broadcast mismatched non-channel dims;
    # this kernel requires identical shapes (as produced by the MAAF block).
    assert x1.shape == x2.shape, "broadcasting not supported; shapes must match"

    orig_shape = x1.shape
    out_dtype = jnp.result_type(x1.dtype, x2.dtype)
    n = x1.size
    if n == 0:
        return jnp.zeros(orig_shape, out_dtype)

    itemsizes = [jnp.dtype(d).itemsize for d in (x1.dtype, x2.dtype, out_dtype)]
    max_itemsize = max(itemsizes)
    # Sublane multiple for the most tightly packed dtype involved:
    # 8 for 4-byte, 16 for 2-byte, 32 for 1-byte dtypes.
    sublane = 8 * max(1, 4 // min(itemsizes))

    max_block_bytes, vmem_limit = _vmem_budget()

    a = jnp.ravel(x1)  # free reshapes: contiguous, no copy
    b = jnp.ravel(x2)

    # Lane-dense 2-D slab path: pick the widest W in {512, 256, 128} that
    # divides n exactly so no padding / output slicing is ever needed.
    slab_w = next((w for w in (512, 256, 128) if n % w == 0), None)

    if slab_w is not None:
        rows = n // slab_w
        max_rows = max(
            sublane,
            (max_block_bytes // (slab_w * max_itemsize)) // sublane * sublane,
        )
        n_blocks = pl.cdiv(rows, max_rows)
        if n * max_itemsize > _SPLIT_BYTES:
            n_blocks = max(n_blocks, 2)  # keep both v7x TensorCores busy
        block_rows = _round_up(pl.cdiv(rows, n_blocks), sublane)
        grid = (pl.cdiv(rows, block_rows),)

        out = pl.pallas_call(
            _hadamard_kernel,
            out_shape=jax.ShapeDtypeStruct((rows, slab_w), out_dtype),
            grid_spec=pl.GridSpec(
                grid=grid,
                in_specs=[
                    pl.BlockSpec((block_rows, slab_w), lambda i: (i, 0)),
                    pl.BlockSpec((block_rows, slab_w), lambda i: (i, 0)),
                ],
                out_specs=pl.BlockSpec((block_rows, slab_w), lambda i: (i, 0)),
            ),
            compiler_params=_compiler_params(vmem_limit),
        )(a.reshape(rows, slab_w), b.reshape(rows, slab_w))
        return out.reshape(orig_shape)

    # Fallback (n not a multiple of 128): flat 1-D blocks; the ragged tail of
    # the last block is masked by Pallas (grid = cdiv), so there is still no
    # jnp.pad of the inputs nor a [:n] slice of the output.
    chunk = 128 * sublane
    max_elems = max(chunk, (max_block_bytes // max_itemsize) // chunk * chunk)
    n_blocks = pl.cdiv(n, max_elems)
    if n * max_itemsize > _SPLIT_BYTES:
        n_blocks = max(n_blocks, 2)
    block_elems = _round_up(pl.cdiv(n, n_blocks), chunk)
    grid = (pl.cdiv(n, block_elems),)

    out = pl.pallas_call(
        _hadamard_kernel,
        out_shape=jax.ShapeDtypeStruct((n,), out_dtype),
        grid_spec=pl.GridSpec(
            grid=grid,
            in_specs=[
                pl.BlockSpec((block_elems,), lambda i: (i,)),
                pl.BlockSpec((block_elems,), lambda i: (i,)),
            ],
            out_specs=pl.BlockSpec((block_elems,), lambda i: (i,)),
        ),
        compiler_params=_compiler_params(vmem_limit),
    )(a, b)
    return out.reshape(orig_shape)


if __name__ == "__main__":
    key = jax.random.PRNGKey(0)
    k1, k2 = jax.random.split(key)
    # Small NCHW inputs consistent with the MAAF fusion block:
    # batch=2, channels=4, spatial=16x16.
    x1 = jax.random.normal(k1, (2, 4, 16, 16), dtype=jnp.float32)
    x2 = jax.random.normal(k2, (2, 4, 16, 16), dtype=jnp.float32)

    y = hadamard(x1, x2)
    jax.block_until_ready(y)

    # Correctness check against the pure-JAX reference (bit-exact for f32).
    ref = x1 * x2
    assert y.shape == ref.shape and y.dtype == ref.dtype
    assert jnp.allclose(y, ref, atol=0, rtol=0)

    print("KERNEL_OK")
</pallas_src>

<mosaic_0001>
module attributes {stable_mosaic.version = 11 : i64} {
  func.func @_hadamard_kernel(%arg0: i32, %arg1: memref<8x512xf32, #tpu.memory_space<vmem>>, %arg2: memref<8x512xf32, #tpu.memory_space<vmem>>, %arg3: memref<8x512xf32, #tpu.memory_space<vmem>>) attributes {dimension_semantics = [#tpu.dimension_semantics<parallel>], iteration_bounds = array<i64: 1>, scalar_prefetch = 0 : i64, scratch_operands = 0 : i64, tpu.core_type = #tpu.core_type<tc>, window_params = [{transform_indices = @transform_0, window_bounds = array<i64: 8, 512>}, {transform_indices = @transform_1, window_bounds = array<i64: 8, 512>}, {transform_indices = @transform_2, window_bounds = array<i64: 8, 512>}]} {
    %c0 = arith.constant 0 : index
    %c0_0 = arith.constant 0 : index
    %0 = vector.load %arg1[%c0, %c0_0] : memref<8x512xf32, #tpu.memory_space<vmem>>, vector<8x512xf32>
    %c0_1 = arith.constant 0 : index
    %c0_2 = arith.constant 0 : index
    %1 = vector.load %arg2[%c0_1, %c0_2] : memref<8x512xf32, #tpu.memory_space<vmem>>, vector<8x512xf32>
    %2 = arith.mulf %0, %1 : vector<8x512xf32>
    %c0_3 = arith.constant 0 : index
    %c0_4 = arith.constant 0 : index
    %3 = vector.load %arg3[%c0_3, %c0_4] : memref<8x512xf32, #tpu.memory_space<vmem>>, vector<8x512xf32>
    tpu.vector_store %arg3[%c0_3, %c0_4], %2 {strides = array<i32>} : memref<8x512xf32, #tpu.memory_space<vmem>>, vector<8x512xf32>,
    return
  }
  func.func @transform_0(%arg0: i32) -> (i32, i32) {
    %c0_i32 = arith.constant 0 : i32
    %c0_i32_0 = arith.constant 0 : i32
    return %arg0, %c0_i32 : i32, i32
  }
  func.func @transform_1(%arg0: i32) -> (i32, i32) {
    %c0_i32 = arith.constant 0 : i32
    %c0_i32_0 = arith.constant 0 : i32
    return %arg0, %c0_i32 : i32, i32
  }
  func.func @transform_2(%arg0: i32) -> (i32, i32) {
    %c0_i32 = arith.constant 0 : i32
    %c0_i32_0 = arith.constant 0 : i32
    return %arg0, %c0_i32 : i32, i32
  }
}

</mosaic_0001>

<bundles_post_ra>
// kernel: tpu_custom_call.1
= control target key start
LH: loop header
LB: loop body
LE: loop exit
PB: predicated region body
PF: predicated region fallthrough
CT: control target
= control target key end

     0   :  { %7 = vsyncpa [#allocation3], 0  ;;  %s216_s0 = inlined_call_operand.hbm [shape: f32[4,512], index: 0, kind: input, shape index: {}]   ;;  %s217_s1 = inlined_call_operand.hbm [shape: f32[4,512], index: 1, kind: input, shape index: {}]   ;;  %s218_s2 = inlined_call_operand.hbm [shape: f32[4,512], index: 2, kind: output, shape index: {}]  }
   0x1   :  { %8 = vsyncpa [#allocation6], 0 }
   0x2   :  { %9 = vsyncpa [#allocation4], 0 }
   0x3   :  { %14 = vsyncadd [#allocation3], 256  ;;  %s151_s9 = smov [#allocation2]   ;;  %s79_s13 = scalar_lea.hbm %s216_s0, 256 }
   0x4   :  { %s15_s10 = sshll.u32 %s151_s9, 4  ;;  %p80_p0 = scmp.ne.s32.totalorder %s216_s0, %s79_s13  ;;  %s16_s10 = int_to_ptr.vmem [resolvable:$true] %s15_s10 }
   0x5   :  { %p83_p1 = scmp.lt.u32.totalorder %s79_s13, %s216_s0 }
   0x7   :  { %p85_p2 = pnand %p83_p1, %p80_p0 }
   0x9   :  { %88 = shalt.err (!%p85_p2)
}
   0xa   :  { %s89_s18 = scalar_lea.vmem %s16_s10, 256  ;;  %s93_s19 = scalar_lea.vmem %s16_s10, 512 }
   0xb   :  { %p90_p3 = scmp.ne.s32.totalorder %s16_s10, %s89_s18  ;;  %p94_p4 = scmp.lt.s32.totalorder %s16_s10, %s16_s10 }
   0xc   :  { %p95_p5 = scmp.lt.s32.totalorder %s93_s19, %s89_s18 }
   0xe   :  { %p96_p6 = por %p95_p5, %p94_p4 }
  0x10   :  { %p97_p7 = pnand %p96_p6, %p90_p3 }
  0x12   :  { %100 = shalt.err (!%p97_p7)
}
  0x13   :  { %s152_s20 = smov 256   ;;  %s153_s21 = smov 16  }
  0x14   :  { %21 = dma.hbm_to_vmem [thread:$0]  %s216_s0, 256, %s16_s10, [#allocation3], %s152_s20, %s152_s20, %s153_s21  }
  0x15   :  { %26 = vsyncadd [#allocation6], 256  ;;  %s154_s24 = smov [#allocation5]   ;;  %s101_s28 = scalar_lea.hbm %s217_s1, 256 }
  0x16   :  { %s27_s25 = sshll.u32 %s154_s24, 4  ;;  %p102_p8 = scmp.ne.s32.totalorder %s217_s1, %s101_s28  ;;  %s28_s25 = int_to_ptr.vmem [resolvable:$true] %s27_s25 }
  0x17   :  { %p105_p9 = scmp.lt.u32.totalorder %s101_s28, %s217_s1 }
  0x19   :  { %p107_p10 = pnand %p105_p9, %p102_p8 }
  0x1b   :  { %110 = shalt.err (!%p107_p10)
}
  0x1c   :  { %s111_s5 = scalar_lea.vmem %s28_s25, 256  ;;  %s115_s0 = scalar_lea.vmem %s28_s25, 512 }
  0x1d   :  { %p112_p11 = scmp.ne.s32.totalorder %s28_s25, %s111_s5  ;;  %p116_p12 = scmp.lt.s32.totalorder %s28_s25, %s28_s25 }
  0x1e   :  { %p117_p13 = scmp.lt.s32.totalorder %s115_s0, %s111_s5 }
  0x20   :  { %p118_p0 = por %p117_p13, %p116_p12 }
  0x22   :  { %p119_p1 = pnand %p118_p0, %p112_p11 }
  0x24   :  { %122 = shalt.err (!%p119_p1)
}
  0x25   :  { %33 = dma.hbm_to_vmem [thread:$0]  %s217_s1, 256, %s28_s25, [#allocation6], %s152_s20, %s152_s20, %s153_s21  }
  0x26   :  { %145 = dma.done.wait [#allocation3], 512  }
  0x27   :  { %146 = vsyncadd [#allocation3], 4294966784 }
  0x28   :  { %147 = dma.done.wait [#allocation6], 512  }
  0x29   :  { %148 = vsyncadd [#allocation6], 4294966784  ;;  %v40_v0 = vld [vmem:[#allocation2] sm:$0xff]  ;;  %v41_v2 = vld [vmem:[#allocation2 + $0x8] sm:$0xff] }
  0x2a   :  { %v44_v1 = vld [vmem:[#allocation5] sm:$0xff]  ;;  %v45_v4 = vld [vmem:[#allocation5 + $0x8] sm:$0xff]  ;;  %v42_v5 = vld [vmem:[#allocation2 + $0x10] sm:$0xff] }
  0x2b   :  { %v48_v3 = vmul.f32 %v44_v1, %v40_v0  ;;  %v46_v6 = vld [vmem:[#allocation5 + $0x10] sm:$0xff]  ;;  %v49_v7 = vmul.f32 %v45_v4, %v41_v2  ;;  %v43_v9 = vld [vmem:[#allocation2 + $0x18] sm:$0xff] }
  0x2c   :  { %v50_v8 = vmul.f32 %v46_v6, %v42_v5  ;;  %v47_v10 = vld [vmem:[#allocation5 + $0x18] sm:$0xff] }
  0x2d   :  { %52 = vst [vmem:[#allocation7] sm:$0xff] %v48_v3  ;;  %v51_v11 = vmul.f32 %v47_v10, %v43_v9  ;;  %53 = vst [vmem:[#allocation7 + $0x8] sm:$0xff] %v49_v7 }
  0x2e   :  { %54 = vst [vmem:[#allocation7 + $0x10] sm:$0xff] %v50_v8 }
  0x2f   :  { %55 = vst [vmem:[#allocation7 + $0x18] sm:$0xff] %v51_v11 }
  0x30   :  { %60 = vsyncadd [#allocation4], 256  ;;  %s155_s1 = smov [#allocation7]  }
  0x31   :  { %s61_s8 = sshll.u32 %s155_s1, 4  ;;  %s62_s8 = int_to_ptr.vmem [resolvable:$true] %s61_s8 }
  0x32   :  { %s123_s9 = scalar_lea.vmem %s62_s8, 256  ;;  %s127_s10 = scalar_lea.vmem %s62_s8, 512 }
  0x33   :  { %p124_p2 = scmp.ne.s32.totalorder %s62_s8, %s123_s9  ;;  %p128_p3 = scmp.lt.s32.totalorder %s62_s8, %s62_s8 }
  0x34   :  { %p129_p4 = scmp.lt.s32.totalorder %s127_s10, %s123_s9 }
  0x36   :  { %p130_p5 = por %p129_p4, %p128_p3 }
  0x38   :  { %p131_p6 = pnand %p130_p5, %p124_p2 }
  0x3a   :  { %134 = shalt.err (!%p131_p6)
}
  0x3b   :  { %s135_s13 = scalar_lea.hbm %s218_s2, 256 }
  0x3c   :  { %p136_p7 = scmp.ne.s32.totalorder %s218_s2, %s135_s13  ;;  %p139_p8 = scmp.lt.u32.totalorder %s135_s13, %s218_s2 }
  0x3e   :  { %p141_p9 = pnand %p139_p8, %p136_p7 }
  0x40   :  { %144 = shalt.err (!%p141_p9)
}
  0x41   :  { %67 = dma.vmem_to_hbm [thread:$0]  %s62_s8, 256, %s218_s2, [#allocation4], %s152_s20, %s152_s20, %s153_s21  }
  0x42   :  { %149 = dma.done.wait [#allocation4], 512  }
  0x43   :  { %150 = vsyncadd [#allocation4], 4294966784 }
  0x44   :  { %71 = vsyncpa [#allocation3], 1 }
  0x45   :  { %72 = vsyncpa [#allocation6], 1 }
  0x46   :  { %73 = vsyncpa [#allocation4], 1 }

</bundles_post_ra>
